<compile_context>
chip_gen: v5e
topology: v5e:2x2
jax: 0.10.0
libtpu: 0.0.40
codegen_flags: <defaults>
</compile_context>

<pallas_src>
import jax
import jax.numpy as jnp
from jax.experimental import pallas as pl
from jax.experimental.pallas import tpu as pltpu


def residual_block_kernel(x_ref, wb1_ref, b1_ref, wb2_ref, b2_ref, mask_ref,
                          out_ref):
    """One block of Nb vertically-padded images, stacked along sublanes.

    x_ref    : (1, Mx, L)  stacked input: 1 leading zero row, then Nb padded
                           (H+2)-row image frames, then zero tail rows;
                           L = 128-padded W*Cin lanes.
    wb1_ref  : (3, L, L)   conv1 block-Toeplitz weights per vertical tap,
                           BN1 scale folded into the columns.
    b1_ref   : (1, L)      folded BN1 bias (tiled across W, lane-padded).
    wb2_ref  : (3, L, L)   conv2 weights with BN2 scale folded in.
    b2_ref   : (1, L)
    mask_ref : (Mx-2, L)   1.0 on real (interior) image rows, 0.0 on vertical
                           pad / alignment rows (in "row j+1" coordinates).
    out_ref  : (1, Mx, L)  rows [2, Mx-3] written; the rest is garbage the
                           wrapper slices away.
    """
    Mx = x_ref.shape[1]
    Mc = Mx - 2
    xs = x_ref[0]                                        # (Mx, L)

    # ---- conv1 (+ folded BN1 scale): one big-M matmul per vertical tap ------
    z1 = jnp.dot(xs[0:Mc, :], wb1_ref[0], preferred_element_type=jnp.float32)
    z1 = z1 + jnp.dot(xs[1:Mc + 1, :], wb1_ref[1],
                      preferred_element_type=jnp.float32)
    z1 = z1 + jnp.dot(xs[2:Mc + 2, :], wb1_ref[2],
                      preferred_element_type=jnp.float32)
    # BN1 bias + ReLU; the mask zeroes the per-image vertical pad rows so they
    # act as conv2's zero padding (replaces the old scratch + its init hazard).
    mid = mask_ref[...] * jnp.maximum(z1 + b1_ref[...], 0.0)    # (Mc, L) f32
    mid = mid.astype(wb2_ref.dtype)

    # ---- conv2 (+ folded BN2 scale) -----------------------------------------
    z2 = jnp.dot(mid[0:Mc - 2, :], wb2_ref[0],
                 preferred_element_type=jnp.float32)
    z2 = z2 + jnp.dot(mid[1:Mc - 1, :], wb2_ref[1],
                      preferred_element_type=jnp.float32)
    z2 = z2 + jnp.dot(mid[2:Mc, :], wb2_ref[2],
                      preferred_element_type=jnp.float32)

    # ---- BN2 bias + identity residual + ReLU --------------------------------
    # Rows of z2 correspond to stacked rows [2, Mx-3]; residual is the matching
    # slice of the (zero-lane-padded) input.
    out = jnp.maximum(z2 + b2_ref[...] + xs[2:Mc, :].astype(jnp.float32), 0.0)
    out_ref[0, 2:Mc, :] = out.astype(out_ref.dtype)


def _band_weights(w_oihw, W):
    """(Cout, Cin, 3, 3) conv weight -> (3, W*Cin, W*Cout) block-Toeplitz
    weights, one per vertical tap ky.  Horizontal zero-padding (pad=1) is
    folded into the band: taps that would read outside [0, W) are dropped."""
    wt = jnp.transpose(w_oihw, (2, 3, 1, 0)).astype(jnp.float32)  # (ky,kx,Ci,Co)
    mats = []
    for ky in range(3):
        m = None
        for kx in range(3):
            # sel[w_in, w_out] = 1 iff w_in == w_out + (kx - 1), clipped.
            sel = jnp.eye(W, k=1 - kx, dtype=jnp.float32)
            blk = jnp.kron(sel, wt[ky, kx])              # (W*Cin, W*Cout)
            m = blk if m is None else m + blk
        mats.append(m)
    return jnp.stack(mats, axis=0)                       # (3, W*Cin, W*Cout)


def residual_block(x_nchw, w1, b1_conv, gamma1, beta1, mean1, var1,
                   w2, b2_conv, gamma2, beta2, mean2, var2,
                   eps=1e-5, images_per_block=8, operand_dtype=jnp.float32):
    """x_nchw: (N, C, H, W) float32, stride=1, downsample=None (Cin == Cout).

    operand_dtype=jnp.bfloat16 halves activation/weight bytes and uses the
    bf16-native MXU path on v6e/v7x (accumulation stays f32).
    """
    N, Cin, H, W = x_nchw.shape
    Cout = w1.shape[0]
    assert Cin == Cout, "identity residual requires in_channels == out_channels"

    WC = W * Cin
    LANE = 128
    L = ((WC + LANE - 1) // LANE) * LANE          # lane-padded W*C (>=128, mult of 128)
    Hp = H + 2                                    # per-image vertically padded height

    Nb = max(1, min(images_per_block, N))         # images stacked per grid step
    num_blocks = -(-N // Nb)
    Npad = num_blocks * Nb
    rows_core = Nb * Hp                           # stacked image-frame rows
    Mx = ((rows_core + 2 + 7) // 8) * 8           # 1 lead row + frames + tail, 8-aligned
    Mc = Mx - 2

    # NCHW -> (N, H, W*C) lane-dense; pad batch, vertical border, lanes; stack.
    x_flat = jnp.transpose(x_nchw, (0, 2, 3, 1)).reshape(N, H, WC)
    x_p = jnp.pad(x_flat, ((0, Npad - N), (1, 1), (0, L - WC)))     # (Npad, Hp, L)
    x_blk = x_p.reshape(num_blocks, rows_core, L)
    x_blk = jnp.pad(x_blk, ((0, 0), (1, Mx - 1 - rows_core), (0, 0)))
    x_blk = x_blk.astype(operand_dtype)                             # (nb, Mx, L)

    # Eval-mode BN folded to per-channel scale/bias; the scale goes into the
    # band-weight columns, only the bias survives into the kernel epilogue.
    s1 = gamma1 / jnp.sqrt(var1 + eps)
    s2 = gamma2 / jnp.sqrt(var2 + eps)
    bias1 = beta1 + (b1_conv - mean1) * s1
    bias2 = beta2 + (b2_conv - mean2) * s2

    wb1 = _band_weights(w1, W) * jnp.tile(s1, W)[None, None, :]
    wb2 = _band_weights(w2, W) * jnp.tile(s2, W)[None, None, :]
    wb1 = jnp.pad(wb1, ((0, 0), (0, L - WC), (0, L - WC))).astype(operand_dtype)
    wb2 = jnp.pad(wb2, ((0, 0), (0, L - WC), (0, L - WC))).astype(operand_dtype)

    b1_t = jnp.pad(jnp.tile(bias1, W), (0, L - WC)).reshape(1, L).astype(jnp.float32)
    b2_t = jnp.pad(jnp.tile(bias2, W), (0, L - WC)).reshape(1, L).astype(jnp.float32)

    # Interior-row mask in "compact" (row j <-> stacked row j+1) coordinates:
    # 1.0 on real image rows, 0.0 on vertical-pad / alignment-tail rows.
    h = jnp.arange(Mc) + 1
    rel = (h - 1) % Hp
    interior = (h - 1 < rows_core) & (rel >= 1) & (rel <= H)
    mask = jnp.broadcast_to(interior.astype(jnp.float32)[:, None], (Mc, L))

    out_raw = pl.pallas_call(
        residual_block_kernel,
        out_shape=jax.ShapeDtypeStruct((num_blocks, Mx, L), jnp.float32),
        grid_spec=pltpu.PrefetchScalarGridSpec(
            num_scalar_prefetch=0,
            grid=(num_blocks,),
            in_specs=[
                pl.BlockSpec((1, Mx, L), lambda n: (n, 0, 0)),
                pl.BlockSpec((3, L, L), lambda n: (0, 0, 0)),
                pl.BlockSpec((1, L), lambda n: (0, 0)),
                pl.BlockSpec((3, L, L), lambda n: (0, 0, 0)),
                pl.BlockSpec((1, L), lambda n: (0, 0)),
                pl.BlockSpec((Mc, L), lambda n: (0, 0)),
            ],
            out_specs=pl.BlockSpec((1, Mx, L), lambda n: (n, 0, 0)),
        ),
        compiler_params=pltpu.CompilerParams(
            dimension_semantics=("parallel",),
            vmem_limit_bytes=32 * 1024 * 1024),
    )(x_blk, wb1, b1_t, wb2, b2_t, mask)

    # (num_blocks, Mx, L): drop the leading zero row / tail rows, split back
    # into images, drop the per-image pad rows, pad lanes and pad images,
    # then back to NCHW.  All free wrapper-side plumbing.
    out = out_raw[:, 1:1 + rows_core, :].reshape(Npad, Hp, L)
    out = out[:N, 1:H + 1, :WC]
    return jnp.transpose(out.reshape(N, H, W, Cout), (0, 3, 1, 2))


def _reference(x, w1, b1c, g1, be1, m1, v1, w2, b2c, g2, be2, m2, v2, eps=1e-5):
    """Pure-JAX reference (eval-mode BN) for verification."""
    def conv(x, w, b):
        y = jax.lax.conv_general_dilated(
            x, w, window_strides=(1, 1), padding=((1, 1), (1, 1)),
            dimension_numbers=("NCHW", "OIHW", "NCHW"))
        return y + b[None, :, None, None]

    def bn(x, g, b, m, v):
        return (x - m[None, :, None, None]) / jnp.sqrt(v + eps)[None, :, None, None] \
               * g[None, :, None, None] + b[None, :, None, None]

    out = jax.nn.relu(bn(conv(x, w1, b1c), g1, be1, m1, v1))
    out = bn(conv(out, w2, b2c), g2, be2, m2, v2)
    return jax.nn.relu(out + x)


if __name__ == "__main__":
    N, C, H, W = 2, 4, 16, 16
    key = jax.random.PRNGKey(0)
    ks = jax.random.split(key, 11)

    x = jax.random.normal(ks[0], (N, C, H, W), jnp.float32)

    # conv1 / conv2 parameters (PyTorch Conv2d layout: (Cout, Cin, 3, 3) + bias)
    w1 = jax.random.normal(ks[1], (C, C, 3, 3), jnp.float32) * 0.1
    b1_conv = jax.random.normal(ks[2], (C,), jnp.float32) * 0.1
    w2 = jax.random.normal(ks[3], (C, C, 3, 3), jnp.float32) * 0.1
    b2_conv = jax.random.normal(ks[4], (C,), jnp.float32) * 0.1

    # BN parameters (eval mode: running stats)
    gamma1 = 1.0 + 0.1 * jax.random.normal(ks[5], (C,), jnp.float32)
    beta1 = 0.1 * jax.random.normal(ks[6], (C,), jnp.float32)
    mean1 = 0.1 * jax.random.normal(ks[7], (C,), jnp.float32)
    var1 = jnp.abs(jax.random.normal(ks[8], (C,), jnp.float32)) + 0.5
    gamma2 = 1.0 + 0.1 * jax.random.normal(ks[9], (C,), jnp.float32)
    beta2 = 0.1 * jax.random.normal(ks[10], (C,), jnp.float32)
    mean2 = jnp.zeros((C,), jnp.float32)
    var2 = jnp.ones((C,), jnp.float32)

    out = residual_block(x, w1, b1_conv, gamma1, beta1, mean1, var1,
                         w2, b2_conv, gamma2, beta2, mean2, var2)
    out = jax.block_until_ready(out)

    ref = _reference(x, w1, b1_conv, gamma1, beta1, mean1, var1,
                     w2, b2_conv, gamma2, beta2, mean2, var2)
    assert out.shape == (N, C, H, W)
    assert jnp.allclose(out, ref, atol=5e-4, rtol=5e-4), \
        f"max err {jnp.max(jnp.abs(out - ref))}"

    print("KERNEL_OK")
</pallas_src>

<mosaic_0001>
module attributes {stable_mosaic.version = 11 : i64} {
  func.func @residual_block_kernel(%arg0: i32, %arg1: memref<1x40x128xf32, #tpu.memory_space<vmem>>, %arg2: memref<3x128x128xf32, #tpu.memory_space<vmem>>, %arg3: memref<1x128xf32, #tpu.memory_space<vmem>>, %arg4: memref<3x128x128xf32, #tpu.memory_space<vmem>>, %arg5: memref<1x128xf32, #tpu.memory_space<vmem>>, %arg6: memref<38x128xf32, #tpu.memory_space<vmem>>, %arg7: memref<1x40x128xf32, #tpu.memory_space<vmem>>) attributes {dimension_semantics = [#tpu.dimension_semantics<parallel>], iteration_bounds = array<i64: 1>, scalar_prefetch = 0 : i64, scratch_operands = 0 : i64, tpu.core_type = #tpu.core_type<tc>, window_params = [{transform_indices = @transform_0, window_bounds = array<i64: 1, 40, 128>}, {pipeline_mode = #tpu.pipeline_mode<synchronous>, transform_indices = @transform_1, window_bounds = array<i64: 3, 128, 128>}, {pipeline_mode = #tpu.pipeline_mode<synchronous>, transform_indices = @transform_2, window_bounds = array<i64: 1, 128>}, {pipeline_mode = #tpu.pipeline_mode<synchronous>, transform_indices = @transform_3, window_bounds = array<i64: 3, 128, 128>}, {pipeline_mode = #tpu.pipeline_mode<synchronous>, transform_indices = @transform_4, window_bounds = array<i64: 1, 128>}, {pipeline_mode = #tpu.pipeline_mode<synchronous>, transform_indices = @transform_5, window_bounds = array<i64: 38, 128>}, {transform_indices = @transform_6, window_bounds = array<i64: 1, 40, 128>}]} {
    %c0 = arith.constant 0 : index
    %c0_0 = arith.constant 0 : index
    %c0_1 = arith.constant 0 : index
    %0 = vector.load %arg1[%c0, %c0_0, %c0_1] : memref<1x40x128xf32, #tpu.memory_space<vmem>>, vector<1x40x128xf32>
    %1 = vector.shape_cast %0 : vector<1x40x128xf32> to vector<40x128xf32>
    %2 = vector.extract_strided_slice %1 {offsets = [0, 0], sizes = [38, 128], strides = [1, 1]} : vector<40x128xf32> to vector<38x128xf32>
    %c0_2 = arith.constant 0 : index
    %c0_3 = arith.constant 0 : index
    %c0_4 = arith.constant 0 : index
    %3 = vector.load %arg2[%c0_2, %c0_3, %c0_4] : memref<3x128x128xf32, #tpu.memory_space<vmem>>, vector<1x128x128xf32>
    %4 = vector.shape_cast %3 : vector<1x128x128xf32> to vector<128x128xf32>
    %cst = arith.constant dense<0.000000e+00> : vector<38x128xf32>
    %5 = tpu.matmul %2, %4, %cst {dimension_numbers = #tpu.dot_dimension_numbers<[1], [0], [0], [1], [0, 0, 1, 1], [], []>} : vector<38x128xf32>, vector<128x128xf32>, vector<38x128xf32> -> vector<38x128xf32>
    %6 = vector.extract_strided_slice %1 {offsets = [1, 0], sizes = [38, 128], strides = [1, 1]} : vector<40x128xf32> to vector<38x128xf32>
    %c1 = arith.constant 1 : index
    %c0_5 = arith.constant 0 : index
    %c0_6 = arith.constant 0 : index
    %7 = vector.load %arg2[%c1, %c0_5, %c0_6] : memref<3x128x128xf32, #tpu.memory_space<vmem>>, vector<1x128x128xf32>
    %8 = vector.shape_cast %7 : vector<1x128x128xf32> to vector<128x128xf32>
    %cst_7 = arith.constant dense<0.000000e+00> : vector<38x128xf32>
    %9 = tpu.matmul %6, %8, %cst_7 {dimension_numbers = #tpu.dot_dimension_numbers<[1], [0], [0], [1], [0, 0, 1, 1], [], []>} : vector<38x128xf32>, vector<128x128xf32>, vector<38x128xf32> -> vector<38x128xf32>
    %10 = arith.addf %5, %9 : vector<38x128xf32>
    %11 = vector.extract_strided_slice %1 {offsets = [2, 0], sizes = [38, 128], strides = [1, 1]} : vector<40x128xf32> to vector<38x128xf32>
    %c2 = arith.constant 2 : index
    %c0_8 = arith.constant 0 : index
    %c0_9 = arith.constant 0 : index
    %12 = vector.load %arg2[%c2, %c0_8, %c0_9] : memref<3x128x128xf32, #tpu.memory_space<vmem>>, vector<1x128x128xf32>
    %13 = vector.shape_cast %12 : vector<1x128x128xf32> to vector<128x128xf32>
    %cst_10 = arith.constant dense<0.000000e+00> : vector<38x128xf32>
    %14 = tpu.matmul %11, %13, %cst_10 {dimension_numbers = #tpu.dot_dimension_numbers<[1], [0], [0], [1], [0, 0, 1, 1], [], []>} : vector<38x128xf32>, vector<128x128xf32>, vector<38x128xf32> -> vector<38x128xf32>
    %15 = arith.addf %10, %14 : vector<38x128xf32>
    %c0_11 = arith.constant 0 : index
    %c0_12 = arith.constant 0 : index
    %16 = vector.load %arg6[%c0_11, %c0_12] : memref<38x128xf32, #tpu.memory_space<vmem>>, vector<38x128xf32>
    %c0_13 = arith.constant 0 : index
    %c0_14 = arith.constant 0 : index
    %17 = vector.load %arg3[%c0_13, %c0_14] : memref<1x128xf32, #tpu.memory_space<vmem>>, vector<1x128xf32>
    %18 = vector.broadcast %17 : vector<1x128xf32> to vector<38x128xf32>
    %19 = arith.addf %15, %18 : vector<38x128xf32>
    %cst_15 = arith.constant 0.000000e+00 : f32
    %20 = vector.broadcast %cst_15 : f32 to vector<38x128xf32>
    %21 = arith.maximumf %19, %20 : vector<38x128xf32>
    %22 = arith.mulf %16, %21 : vector<38x128xf32>
    %23 = vector.extract_strided_slice %22 {offsets = [0, 0], sizes = [36, 128], strides = [1, 1]} : vector<38x128xf32> to vector<36x128xf32>
    %c0_16 = arith.constant 0 : index
    %c0_17 = arith.constant 0 : index
    %c0_18 = arith.constant 0 : index
    %24 = vector.load %arg4[%c0_16, %c0_17, %c0_18] : memref<3x128x128xf32, #tpu.memory_space<vmem>>, vector<1x128x128xf32>
    %25 = vector.shape_cast %24 : vector<1x128x128xf32> to vector<128x128xf32>
    %cst_19 = arith.constant dense<0.000000e+00> : vector<36x128xf32>
    %26 = tpu.matmul %23, %25, %cst_19 {dimension_numbers = #tpu.dot_dimension_numbers<[1], [0], [0], [1], [0, 0, 1, 1], [], []>} : vector<36x128xf32>, vector<128x128xf32>, vector<36x128xf32> -> vector<36x128xf32>
    %27 = vector.extract_strided_slice %22 {offsets = [1, 0], sizes = [36, 128], strides = [1, 1]} : vector<38x128xf32> to vector<36x128xf32>
    %c1_20 = arith.constant 1 : index
    %c0_21 = arith.constant 0 : index
    %c0_22 = arith.constant 0 : index
    %28 = vector.load %arg4[%c1_20, %c0_21, %c0_22] : memref<3x128x128xf32, #tpu.memory_space<vmem>>, vector<1x128x128xf32>
    %29 = vector.shape_cast %28 : vector<1x128x128xf32> to vector<128x128xf32>
    %cst_23 = arith.constant dense<0.000000e+00> : vector<36x128xf32>
    %30 = tpu.matmul %27, %29, %cst_23 {dimension_numbers = #tpu.dot_dimension_numbers<[1], [0], [0], [1], [0, 0, 1, 1], [], []>} : vector<36x128xf32>, vector<128x128xf32>, vector<36x128xf32> -> vector<36x128xf32>
    %31 = arith.addf %26, %30 : vector<36x128xf32>
    %32 = vector.extract_strided_slice %22 {offsets = [2, 0], sizes = [36, 128], strides = [1, 1]} : vector<38x128xf32> to vector<36x128xf32>
    %c2_24 = arith.constant 2 : index
    %c0_25 = arith.constant 0 : index
    %c0_26 = arith.constant 0 : index
    %33 = vector.load %arg4[%c2_24, %c0_25, %c0_26] : memref<3x128x128xf32, #tpu.memory_space<vmem>>, vector<1x128x128xf32>
    %34 = vector.shape_cast %33 : vector<1x128x128xf32> to vector<128x128xf32>
    %cst_27 = arith.constant dense<0.000000e+00> : vector<36x128xf32>
    %35 = tpu.matmul %32, %34, %cst_27 {dimension_numbers = #tpu.dot_dimension_numbers<[1], [0], [0], [1], [0, 0, 1, 1], [], []>} : vector<36x128xf32>, vector<128x128xf32>, vector<36x128xf32> -> vector<36x128xf32>
    %36 = arith.addf %31, %35 : vector<36x128xf32>
    %c0_28 = arith.constant 0 : index
    %c0_29 = arith.constant 0 : index
    %37 = vector.load %arg5[%c0_28, %c0_29] : memref<1x128xf32, #tpu.memory_space<vmem>>, vector<1x128xf32>
    %38 = vector.broadcast %37 : vector<1x128xf32> to vector<36x128xf32>
    %39 = arith.addf %36, %38 : vector<36x128xf32>
    %40 = vector.extract_strided_slice %1 {offsets = [2, 0], sizes = [36, 128], strides = [1, 1]} : vector<40x128xf32> to vector<36x128xf32>
    %41 = arith.addf %39, %40 : vector<36x128xf32>
    %cst_30 = arith.constant 0.000000e+00 : f32
    %42 = vector.broadcast %cst_30 : f32 to vector<36x128xf32>
    %43 = arith.maximumf %41, %42 : vector<36x128xf32>
    %c0_31 = arith.constant 0 : index
    %c2_32 = arith.constant 2 : index
    %c0_33 = arith.constant 0 : index
    %44 = vector.load %arg7[%c0_31, %c2_32, %c0_33] : memref<1x40x128xf32, #tpu.memory_space<vmem>>, vector<1x36x128xf32>
    %45 = vector.shape_cast %44 : vector<1x36x128xf32> to vector<36x128xf32>
    %46 = vector.shape_cast %43 : vector<36x128xf32> to vector<1x36x128xf32>
    tpu.vector_store %arg7[%c0_31, %c2_32, %c0_33], %46 {strides = array<i32>} : memref<1x40x128xf32, #tpu.memory_space<vmem>>, vector<1x36x128xf32>,
    return
  }
  func.func @transform_0(%arg0: i32) -> (i32, i32, i32) {
    %c0_i32 = arith.constant 0 : i32
    %c0_i32_0 = arith.constant 0 : i32
    %c0_i32_1 = arith.constant 0 : i32
    return %arg0, %c0_i32, %c0_i32_0 : i32, i32, i32
  }
  func.func @transform_1(%arg0: i32) -> (i32, i32, i32) {
    %c0_i32 = arith.constant 0 : i32
    %c0_i32_0 = arith.constant 0 : i32
    %c0_i32_1 = arith.constant 0 : i32
    %c0_i32_2 = arith.constant 0 : i32
    return %c0_i32, %c0_i32_0, %c0_i32_1 : i32, i32, i32
  }
  func.func @transform_2(%arg0: i32) -> (i32, i32) {
    %c0_i32 = arith.constant 0 : i32
    %c0_i32_0 = arith.constant 0 : i32
    %c0_i32_1 = arith.constant 0 : i32
    return %c0_i32, %c0_i32_0 : i32, i32
  }
  func.func @transform_3(%arg0: i32) -> (i32, i32, i32) {
    %c0_i32 = arith.constant 0 : i32
    %c0_i32_0 = arith.constant 0 : i32
    %c0_i32_1 = arith.constant 0 : i32
    %c0_i32_2 = arith.constant 0 : i32
    return %c0_i32, %c0_i32_0, %c0_i32_1 : i32, i32, i32
  }
  func.func @transform_4(%arg0: i32) -> (i32, i32) {
    %c0_i32 = arith.constant 0 : i32
    %c0_i32_0 = arith.constant 0 : i32
    %c0_i32_1 = arith.constant 0 : i32
    return %c0_i32, %c0_i32_0 : i32, i32
  }
  func.func @transform_5(%arg0: i32) -> (i32, i32) {
    %c0_i32 = arith.constant 0 : i32
    %c0_i32_0 = arith.constant 0 : i32
    %c0_i32_1 = arith.constant 0 : i32
    return %c0_i32, %c0_i32_0 : i32, i32
  }
  func.func @transform_6(%arg0: i32) -> (i32, i32, i32) {
    %c0_i32 = arith.constant 0 : i32
    %c0_i32_0 = arith.constant 0 : i32
    %c0_i32_1 = arith.constant 0 : i32
    return %arg0, %c0_i32, %c0_i32_0 : i32, i32, i32
  }
}

</mosaic_0001>

<bundles_post_ra>
// kernel: tpu_custom_call.1
= control target key start
LH: loop header
LB: loop body
LE: loop exit
PB: predicated region body
PF: predicated region fallthrough
CT: control target
= control target key end

     0   :  { %11 = vsyncpa [#allocation3], 0  ;;  %s856_s0 = inlined_call_operand.hbm [shape: f32[1,40,128], index: 0, kind: input, shape index: {}]   ;;  %s857_s1 = inlined_call_operand.hbm [shape: f32[3,128,128], index: 1, kind: input, shape index: {}]   ;;  %s858_s2 = inlined_call_operand.vmem [shape: f32[1,128], index: 2, kind: input, shape index: {}]   ;;  %s859_s3 = inlined_call_operand.hbm [shape: f32[3,128,128], index: 3, kind: input, shape index: {}]   ;;  %s860_s4 = inlined_call_operand.vmem [shape: f32[1,128], index: 4, kind: input, shape index: {}]   ;;  %s861_s5 = inlined_call_operand.hbm [shape: f32[38,128], index: 5, kind: input, shape index: {}]   ;;  %s862_s6 = inlined_call_operand.hbm [shape: f32[1,40,128], index: 6, kind: output, shape index: {}]  }
   0x1   :  { %12 = vsyncpa [#allocation6], 0 }
   0x2   :  { %13 = vsyncpa [#allocation9], 0 }
   0x3   :  { %14 = vsyncpa [#allocation4], 0  ;;  %s32_s23 = sshll.u32 %s857_s1, 4  ;;  %s700_s24 = smov [#allocation5]   ;;  %s33_s23 = int_to_ptr.hbm [resolvable:$true] %s32_s23 }
   0x4   :  { %s34_s25 = sshll.u32 %s700_s24, 4  ;;  %s19_s28 = sshll.u32 %s856_s0, 4  ;;  %s35_s25 = int_to_ptr.vmem [resolvable:$true] %s34_s25  ;;  %s20_s28 = int_to_ptr.hbm [resolvable:$true] %s19_s28 }
   0x5   :  { %s701_s29 = smov 128   ;;  %s702_s30 = smov 8  }
   0x6   :  { %40 = dma.hbm_to_vmem [thread:$0]  %s33_s23, 6144, %s35_s25, [#allocation6], %s701_s29, %s701_s29, %s702_s30  }
   0x7   :  { %s703_s7 = smov [#allocation2]   ;;  %s47_s1 = sshll.u32 %s859_s3, 4  ;;  %s48_s1 = int_to_ptr.hbm [resolvable:$true] %s47_s1 }
   0x8   :  { %s21_s8 = sshll.u32 %s703_s7, 4  ;;  %s62_s12 = sshll.u32 %s861_s5, 4  ;;  %s22_s8 = int_to_ptr.vmem [resolvable:$true] %s21_s8  ;;  %s63_s12 = int_to_ptr.hbm [resolvable:$true] %s62_s12 }
   0x9   :  { %27 = dma.hbm_to_vmem [thread:$0]  %s20_s28, 640, %s22_s8, [#allocation3], %s701_s29, %s701_s29, %s702_s30  }
   0xa   :  { %s704_s13 = smov [#allocation7]   ;;  %s705_s15 = smov [#allocation8]  }
   0xb   :  { %s49_s14 = sshll.u32 %s704_s13, 4  ;;  %s64_s3 = sshll.u32 %s705_s15, 4  ;;  %s50_s14 = int_to_ptr.vmem [resolvable:$true] %s49_s14  ;;  %s65_s3 = int_to_ptr.vmem [resolvable:$true] %s64_s3 }
   0xc   :  { %55 = dma.hbm_to_vmem [thread:$0]  %s48_s1, 6144, %s50_s14, [#allocation6], %s701_s29, %s701_s29, %s702_s30  }
   0xd   :  { %70 = dma.hbm_to_vmem [thread:$0]  %s63_s12, 640, %s65_s3, [#allocation9], %s701_s29, %s701_s29, %s702_s30  }
   0xe   :  { %692 = dma.done.wait [#allocation3], 640  }
   0xf   :  { %693 = vsyncadd [#allocation3], 4294966656 }
  0x10   :  { %694 = dma.done.wait [#allocation6], 12288  }
  0x11   :  { %695 = vsyncadd [#allocation6], 4294955008 }
  0x12   :  { %696 = dma.done.wait [#allocation9], 640  }
  0x13   :  { %697 = vsyncadd [#allocation9], 4294966656  ;;  %v225_v0 = vld [vmem:[#allocation5 + $0x178] sm:$0xff]  ;;  %v224_v1 = vld [vmem:[#allocation5 + $0x170] sm:$0xff]  ;;  %vm226_vm0 = vcmask 1045504   ;;  %vm130_vm1 = vcmask 1046528  }
  0x14   :  { %v124_v2 = vld [vmem:[#allocation5 + $0xf8] sm:$0xff]  ;;  %241 = vmatpush.msra.mxu2 %v225_v0  ;;  %v123_v4 = vld [vmem:[#allocation5 + $0xf0] sm:$0xff]  ;;  %v223_v5 = vld [vmem:[#allocation5 + $0x168] sm:$0xff]  ;;  %s516_s21 = sshll.u32 %s862_s6, 4  ;;  %s517_s21 = int_to_ptr.hbm [resolvable:$true] %s516_s21 }
  0x15   :  { %145 = vmatpush.msra.mxu0 %v124_v2  ;;  %v107_v3 = vld [vmem:[#allocation5 + $0x78] sm:$0xff]  ;;  %v106_v6 = vld [vmem:[#allocation5 + $0x70] sm:$0xff]  ;;  %v122_v7 = vld [vmem:[#allocation5 + $0xe8] sm:$0xff] }
  0x16   :  { %177 = vmatpush.msra.mxu1 %v107_v3  ;;  %242 = vmatpush.msra.mxu2 %v224_v1  ;;  %v105_v8 = vld [vmem:[#allocation5 + $0x68] sm:$0xff]  ;;  %v222_v9 = vld [vmem:[#allocation5 + $0x160] sm:$0xff]  ;;  %v221_v12 = vld [vmem:[#allocation5 + $0x158] sm:$0xff] }
  0x17   :  { %146 = vmatpush.msra.mxu0 %v123_v4  ;;  %v121_v10 = vld [vmem:[#allocation5 + $0xe0] sm:$0xff]  ;;  %v120_v13 = vld [vmem:[#allocation5 + $0xd8] sm:$0xff]  ;;  %v220_v15 = vld [vmem:[#allocation5 + $0x150] sm:$0xff] }
  0x18   :  { %178 = vmatpush.msra.mxu1 %v106_v6  ;;  %243 = vmatpush.msra.mxu2 %v223_v5  ;;  %v104_v11 = vld [vmem:[#allocation5 + $0x60] sm:$0xff]  ;;  %v103_v14 = vld [vmem:[#allocation5 + $0x58] sm:$0xff]  ;;  %v119_v16 = vld [vmem:[#allocation5 + $0xd0] sm:$0xff] }
  0x19   :  { %147 = vmatpush.msra.mxu0 %v122_v7  ;;  %v102_v17 = vld [vmem:[#allocation5 + $0x50] sm:$0xff]  ;;  %v219_v18 = vld [vmem:[#allocation5 + $0x148] sm:$0xff]  ;;  %v218_v21 = vld [vmem:[#allocation5 + $0x140] sm:$0xff] }
  0x1a   :  { %179 = vmatpush.msra.mxu1 %v105_v8  ;;  %244 = vmatpush.msra.mxu2 %v222_v9  ;;  %v118_v19 = vld [vmem:[#allocation5 + $0xc8] sm:$0xff]  ;;  %v117_v22 = vld [vmem:[#allocation5 + $0xc0] sm:$0xff]  ;;  %v217_v24 = vld [vmem:[#allocation5 + $0x138] sm:$0xff] }
  0x1b   :  { %148 = vmatpush.msra.mxu0 %v121_v10  ;;  %v101_v20 = vld [vmem:[#allocation5 + $0x48] sm:$0xff]  ;;  %v100_v23 = vld [vmem:[#allocation5 + $0x40] sm:$0xff]  ;;  %v116_v25 = vld [vmem:[#allocation5 + $0xb8] sm:$0xff] }
  0x1c   :  { %180 = vmatpush.msra.mxu1 %v104_v11  ;;  %245 = vmatpush.msra.mxu2 %v221_v12  ;;  %v99_v26 = vld [vmem:[#allocation5 + $0x38] sm:$0xff]  ;;  %v216_v27 = vld [vmem:[#allocation5 + $0x130] sm:$0xff]  ;;  %v215_v30 = vld [vmem:[#allocation5 + $0x128] sm:$0xff] }
  0x1d   :  { %149 = vmatpush.msra.mxu0 %v120_v13  ;;  %v115_v28 = vld [vmem:[#allocation5 + $0xb0] sm:$0xff]  ;;  %v114_v31 = vld [vmem:[#allocation5 + $0xa8] sm:$0xff]  ;;  %v214_v33 = vld [vmem:[#allocation5 + $0x120] sm:$0xff] }
  0x1e   :  { %181 = vmatpush.msra.mxu1 %v103_v14  ;;  %246 = vmatpush.msra.mxu2 %v220_v15  ;;  %v98_v29 = vld [vmem:[#allocation5 + $0x30] sm:$0xff]  ;;  %v97_v32 = vld [vmem:[#allocation5 + $0x28] sm:$0xff]  ;;  %v113_v34 = vld [vmem:[#allocation5 + $0xa0] sm:$0xff] }
  0x1f   :  { %150 = vmatpush.msra.mxu0 %v119_v16  ;;  %v213_v35 = vld [vmem:[#allocation5 + $0x118] sm:$0xff]  ;;  %v96_v36 = vld [vmem:[#allocation5 + $0x20] sm:$0xff]  ;;  %v212_v41 = vld [vmem:[#allocation5 + $0x110] sm:$0xff] }
  0x20   :  { %182 = vmatpush.msra.mxu1 %v102_v17  ;;  %247 = vmatpush.msra.mxu2 %v219_v18  ;;  %v112_v37 = vld [vmem:[#allocation5 + $0x98] sm:$0xff]  ;;  %v766_v39 = vld [vmem:[#allocation2 + $0x8] sm:$0xff]  ;;  %v111_v42 = vld [vmem:[#allocation5 + $0x90] sm:$0xff] }
  0x21   :  { %151 = vmatpush.msra.mxu0 %v118_v19  ;;  %v87_v38 = vld [vmem:[#allocation2] sm:$0xff]  ;;  %v94_v43 = vld [vmem:[#allocation5 + $0x10] sm:$0xff]  ;;  %v228_v45 = vrot.slane %v766_v39, 2  ;;  %v211_v46 = vld [vmem:[#allocation5 + $0x108] sm:$0xff]  ;;  %v132_v49 = vrot.slane %v766_v39, 1 }
  0x22   :  { %183 = vmatpush.msra.mxu1 %v101_v20  ;;  %248 = vmatpush.msra.mxu2 %v218_v21  ;;  %v95_v40 = vld [vmem:[#allocation5 + $0x18] sm:$0xff]  ;;  %v227_v44 = vrot.slane %v87_v38, 2  ;;  %v110_v47 = vld [vmem:[#allocation5 + $0x88] sm:$0xff]  ;;  %v131_v48 = vrot.slane %v87_v38, 1  ;;  %v210_v51 = vld [vmem:[#allocation5 + $0x100] sm:$0xff] }
  0x23   :  { %152 = vmatpush.msra.mxu0 %v117_v22  ;;  %v93_v50 = vld [vmem:[#allocation5 + $0x8] sm:$0xff]  ;;  %v109_v52 = vld [vmem:[#allocation5 + $0x80] sm:$0xff]  ;;  %v317_v58 = vld [vmem:[#allocation7 + $0x78] sm:$0xff] }
  0x24   :  { %184 = vmatpush.msra.mxu1 %v100_v23  ;;  %249 = vmatpush.msra.mxu2 %v217_v24  ;;  %v771_v53 = vsel %vm226_vm0, %v227_v44, %v228_v45  ;;  %v92_v54 = vld [vmem:[#allocation5] sm:$0xff]  ;;  %v133_v55 = vsel %vm130_vm1, %v131_v48, %v132_v49  ;;  %v774_v56 = vld [vmem:[#allocation2 + $0x10] sm:$0xff]  ;;  %v316_v59 = vld [vmem:[#allocation7 + $0x70] sm:$0xff] }
  0x25   :  { %153 = vmatpush.msra.mxu0 %v116_v25  ;;  %v230_v57 = vrot.slane %v774_v56, 2  ;;  %v134_v60 = vrot.slane %v774_v56, 1  ;;  %v315_v61 = vld [vmem:[#allocation7 + $0x68] sm:$0xff]  ;;  %v334_v62 = vld [vmem:[#allocation7 + $0xf8] sm:$0xff]  ;;  %v333_v0 = vld [vmem:[#allocation7 + $0xf0] sm:$0xff] }
  0x26   :  { %185 = vmatpush.msra.mxu1 %v99_v26  ;;  %250 = vmatpush.msra.mxu2 %v216_v27  ;;  %v779_v63 = vld [vmem:[#allocation7 + $0x178] sm:$0xff]  ;;  %v781_v1 = vld [vmem:[#allocation7 + $0x170] sm:$0xff]  ;;  %v314_v3 = vld [vmem:[#allocation7 + $0x60] sm:$0xff] }
  0x27   :  { %154 = vmatpush.msra.mxu0 %v115_v28  ;;  %354 = vmatpush.msra.mxu3 %v334_v62  ;;  %v784_v2 = vsel %vm226_vm0, %v228_v45, %v230_v57  ;;  %v135_v4 = vsel %vm130_vm1, %v132_v49, %v134_v60  ;;  %v90_v5 = vld [vmem:[#allocation2 + $0x18] sm:$0xff]  ;;  %v313_v6 = vld [vmem:[#allocation7 + $0x58] sm:$0xff]  ;;  %v332_v7 = vld [vmem:[#allocation7 + $0xe8] sm:$0xff] }
  0x28   :  { %186 = vmatpush.msra.mxu1 %v98_v29  ;;  %251 = vmatpush.msra.mxu2 %v215_v30  ;;  %v790_v8 = vld [vmem:[#allocation7 + $0x168] sm:$0xff]  ;;  %v232_v9 = vrot.slane %v90_v5, 2  ;;  %v312_v10 = vld [vmem:[#allocation7 + $0x50] sm:$0xff]  ;;  %v331_v11 = vld [vmem:[#allocation7 + $0xe0] sm:$0xff]  ;;  %v136_v12 = vrot.slane %v90_v5, 1 }
  0x29   :  { %155 = vmatpush.msra.mxu0 %v114_v31  ;;  %355 = vmatpush.msra.mxu3 %v333_v0  ;;  %v793_v13 = vld [vmem:[#allocation7 + $0x160] sm:$0xff]  ;;  %v311_v14 = vld [vmem:[#allocation7 + $0x48] sm:$0xff]  ;;  %v330_v15 = vld [vmem:[#allocation7 + $0xd8] sm:$0xff] }
  0x2a   :  { %187 = vmatpush.msra.mxu1 %v97_v32  ;;  %252 = vmatpush.msra.mxu2 %v214_v33  ;;  %v796_v16 = vld [vmem:[#allocation7 + $0x158] sm:$0xff]  ;;  %v799_v17 = vsel %vm226_vm0, %v230_v57, %v232_v9  ;;  %v310_v18 = vld [vmem:[#allocation7 + $0x40] sm:$0xff]  ;;  %v137_v19 = vsel %vm130_vm1, %v134_v60, %v136_v12  ;;  %v308_v23 = vld [vmem:[#allocation7 + $0x30] sm:$0xff] }
  0x2b   :  { %156 = vmatpush.msra.mxu0 %v113_v34  ;;  %356 = vmatpush.msra.mxu3 %v332_v7  ;;  %v91_v20 = vld [vmem:[#allocation2 + $0x20] sm:$0xff]  ;;  %v307_v27 = vld [vmem:[#allocation7 + $0x28] sm:$0xff]  ;;  %v329_v28 = vld [vmem:[#allocation7 + $0xd0] sm:$0xff] }
  0x2c   :  { %188 = vmatpush.msra.mxu1 %v96_v36  ;;  %253 = vmatpush.msra.mxu2 %v213_v35  ;;  %v309_v21 = vld [vmem:[#allocation7 + $0x38] sm:$0xff]  ;;  %v806_v22 = vrot.slane %v91_v20, 2  ;;  %v138_v24 = vrot.slane %v91_v20, 1  ;;  %v815_v29 = vld [vmem:[#allocation7 + $0x150] sm:$0xff]  ;;  %v306_v30 = vld [vmem:[#allocation7 + $0x20] sm:$0xff] }
  0x2d   :  { %157 = vmatpush.msra.mxu0 %v112_v37  ;;  %357 = vmatpush.msra.mxu3 %v331_v11  ;;  %v328_v31 = vld [vmem:[#allocation7 + $0xc8] sm:$0xff]  ;;  %v305_v33 = vld [vmem:[#allocation7 + $0x18] sm:$0xff]  ;;  %v327_v34 = vld [vmem:[#allocation7 + $0xc0] sm:$0xff] }
  0x2e   :  { %189 = vmatpush.msra.mxu1 %v95_v40  ;;  %254 = vmatpush.msra.mxu2 %v212_v41  ;;  %v810_v25 = vsel %vm226_vm0, %v232_v9, %v806_v22  ;;  %v139_v26 = vsel %vm130_vm1, %v136_v12, %v138_v24  ;;  %v428_v32 = vld [vmem:[#allocation7 + $0x148] sm:$0xff]  ;;  %v427_v35 = vld [vmem:[#allocation7 + $0x140] sm:$0xff]  ;;  %v304_v36 = vld [vmem:[#allocation7 + $0x10] sm:$0xff] }
  0x2f   :  { %158 = vmatpush.msra.mxu0 %v111_v42  ;;  %358 = vmatpush.msra.mxu3 %v330_v15  ;;  %v326_v37 = vld [vmem:[#allocation7 + $0xb8] sm:$0xff]  ;;  %v325_v40 = vld [vmem:[#allocation7 + $0xb0] sm:$0xff]  ;;  %v302_v42 = vld [vmem:[#allocation7] sm:$0xff] }
  0x30   :  { %190 = vmatpush.msra.mxu1 %v94_v43  ;;  %255 = vmatpush.msra.mxu2 %v211_v46  ;;  %v425_v41 = vld [vmem:[#allocation7 + $0x130] sm:$0xff]  ;;  %v324_v43 = vld [vmem:[#allocation7 + $0xa8] sm:$0xff]  ;;  %v323_v45 = vld [vmem:[#allocation7 + $0xa0] sm:$0xff] }
  0x31   :  { %159 = vmatpush.msra.mxu0 %v110_v47  ;;  %359 = vmatpush.msra.mxu3 %v329_v28  ;;  %v424_v44 = vld [vmem:[#allocation7 + $0x128] sm:$0xff]  ;;  %v423_v46 = vld [vmem:[#allocation7 + $0x120] sm:$0xff]  ;;  %v322_v47 = vld [vmem:[#allocation7 + $0x98] sm:$0xff] }
  0x32   :  { %191 = vmatpush.msra.mxu1 %v93_v50  ;;  %256 = vmatpush.msra.mxu2 %v210_v51  ;;  %v422_v48 = vld [vmem:[#allocation7 + $0x118] sm:$0xff]  ;;  %v321_v49 = vld [vmem:[#allocation7 + $0x90] sm:$0xff]  ;;  %v320_v51 = vld [vmem:[#allocation7 + $0x88] sm:$0xff] }
  0x33   :  { %160 = vmatpush.msra.mxu0 %v109_v52  ;;  %257 = vmatmul.f32.vlgmr.msra.gmra.mxu2 %v771_v53  ;;  %v421_v50 = vld [vmem:[#allocation7 + $0x110] sm:$0xff]  ;;  %v420_v52 = vld [vmem:[#allocation7 + $0x108] sm:$0xff] }
  0x34   :  { %192 = vmatpush.msra.mxu1 %v92_v54  ;;  %161 = vmatmul.f32.vlgmr.msra.gmra.mxu0 %v133_v55  ;;  %v319_v54 = vld [vmem:[#allocation7 + $0x80] sm:$0xff]  ;;  %v279_v11 = vld [vmem:[#allocation8 + $0x8] sm:$0xff] }
  0x35   :  { %193 = vmatmul.f32.vlgmr.msra.gmra.mxu1 %v87_v38  ;;  %386 = vmatpush.msrb.mxu0 %v317_v58  ;;  %v426_v38 = vld [vmem:[#allocation7 + $0x138] sm:$0xff]  ;;  %v419_v55 = vld [vmem:[#allocation7 + $0x100] sm:$0xff] }
  0x36   :  { %531 = vmatpush.msrb.mxu2 %v317_v58  ;;  %449 = vmatpush.msrb.mxu1 %v779_v63 }
  0x37   :  { %387 = vmatpush.msrb.mxu0 %v316_v59  ;;  %360 = vmatpush.msra.mxu3 %v328_v31 }
  0x38   :  { %532 = vmatpush.msrb.mxu2 %v316_v59  ;;  %450 = vmatpush.msrb.mxu1 %v781_v1  ;;  %v827_v59 = vld [vmem:[%s858_s2] ss:$0 sm:$0xff] }
  0x39   :  { %388 = vmatpush.msrb.mxu0 %v315_v61  ;;  %361 = vmatpush.msra.mxu3 %v327_v34 }
  0x3a   :  { %533 = vmatpush.msrb.mxu2 %v315_v61  ;;  %451 = vmatpush.msrb.mxu1 %v790_v8 }
  0x3b   :  { %260 = vmatmul.f32.gmra.mxu2 %v784_v2  ;;  %389 = vmatpush.msrb.mxu0 %v314_v3 }
  0x3c   :  { %164 = vmatmul.f32.gmra.mxu0 %v135_v4  ;;  %534 = vmatpush.msrb.mxu2 %v314_v3 }
  0x3d   :  { %196 = vmatmul.f32.gmra.mxu1 %v766_v39  ;;  %390 = vmatpush.msrb.mxu0 %v313_v6  ;;  %v303_v39 = vld [vmem:[#allocation7 + $0x8] sm:$0xff] }
  0x3e   :  { %452 = vmatpush.msrb.mxu1 %v793_v13  ;;  %535 = vmatpush.msrb.mxu2 %v313_v6 }
  0x3f   :  { %391 = vmatpush.msrb.mxu0 %v312_v10  ;;  %362 = vmatpush.msra.mxu3 %v326_v37 }
  0x40   :  { %453 = vmatpush.msrb.mxu1 %v796_v16  ;;  %536 = vmatpush.msrb.mxu2 %v312_v10 }
  0x41   :  { %392 = vmatpush.msrb.mxu0 %v311_v14  ;;  %363 = vmatpush.msra.mxu3 %v325_v40 }
  0x42   :  { %537 = vmatpush.msrb.mxu2 %v311_v14  ;;  %454 = vmatpush.msrb.mxu1 %v815_v29 }
  0x43   :  { %263 = vmatmul.f32.gmra.mxu2 %v799_v17  ;;  %393 = vmatpush.msrb.mxu0 %v310_v18 }
  0x44   :  { %167 = vmatmul.f32.gmra.mxu0 %v137_v19  ;;  %538 = vmatpush.msrb.mxu2 %v310_v18 }
  0x45   :  { %199 = vmatmul.f32.gmra.mxu1 %v774_v56  ;;  %394 = vmatpush.msrb.mxu0 %v309_v21 }
  0x46   :  { %539 = vmatpush.msrb.mxu2 %v309_v21  ;;  %455 = vmatpush.msrb.mxu1 %v428_v32 }
  0x47   :  { %395 = vmatpush.msrb.mxu0 %v308_v23  ;;  %364 = vmatpush.msra.mxu3 %v324_v43 }
  0x48   :  { %540 = vmatpush.msrb.mxu2 %v308_v23  ;;  %456 = vmatpush.msrb.mxu1 %v427_v35 }
  0x49   :  { %396 = vmatpush.msrb.mxu0 %v307_v27  ;;  %365 = vmatpush.msra.mxu3 %v323_v45 }
  0x4a   :  { %541 = vmatpush.msrb.mxu2 %v307_v27  ;;  %457 = vmatpush.msrb.mxu1 %v426_v38 }
  0x4b   :  { %266 = vmatmul.f32.gmra.mxu2 %v810_v25  ;;  %397 = vmatpush.msrb.mxu0 %v306_v30 }
  0x4c   :  { %170 = vmatmul.f32.gmra.mxu0 %v139_v26  ;;  %542 = vmatpush.msrb.mxu2 %v306_v30 }
  0x4d   :  { %202 = vmatmul.f32.gmra.mxu1 %v90_v5  ;;  %398 = vmatpush.msrb.mxu0 %v305_v33 }
  0x4e   :  { %543 = vmatpush.msrb.mxu2 %v305_v33  ;;  %458 = vmatpush.msrb.mxu1 %v425_v41 }
  0x4f   :  { %399 = vmatpush.msrb.mxu0 %v304_v36  ;;  %366 = vmatpush.msra.mxu3 %v322_v47 }
  0x50   :  { %544 = vmatpush.msrb.mxu2 %v304_v36  ;;  %459 = vmatpush.msrb.mxu1 %v424_v44 }
  0x51   :  { %400 = vmatpush.msrb.mxu0 %v303_v39  ;;  %367 = vmatpush.msra.mxu3 %v321_v49 }
  0x52   :  { %545 = vmatpush.msrb.mxu2 %v303_v39  ;;  %460 = vmatpush.msrb.mxu1 %v423_v46 }
  0x53   :  { %269 = vmatmul.f32.gmra.mxu2 %v806_v22  ;;  %401 = vmatpush.msrb.mxu0 %v302_v42 }
  0x54   :  { %173 = vmatmul.f32.gmra.mxu0 %v138_v24  ;;  %546 = vmatpush.msrb.mxu2 %v302_v42  ;;  %v281_v42 = vld [vmem:[#allocation8 + $0x18] sm:$0xff] }
  0x55   :  { %205 = vmatmul.f32.gmra.mxu1 %v91_v20  ;;  %368 = vmatpush.msra.mxu3 %v320_v51 }
  0x56   :  { %461 = vmatpush.msrb.mxu1 %v422_v48 }
  0x57   :  { %369 = vmatpush.msra.mxu3 %v319_v54  ;;  %v282_v54 = vld [vmem:[#allocation8 + $0x20] sm:$0x3f] }
  0x58   :  { %462 = vmatpush.msrb.mxu1 %v421_v50 }
  0x59   :  { %547 = vmatpush.msrb.mxu3 %v779_v63 }
  0x5a   :  { %463 = vmatpush.msrb.mxu1 %v420_v52 }
  0x5b   :  { %548 = vmatpush.msrb.mxu3 %v781_v1  ;;  %v278_v1 = vld [vmem:[#allocation8] sm:$0xff] }
  0x5c   :  { %464 = vmatpush.msrb.mxu1 %v419_v55 }
  0x5d   :  { %549 = vmatpush.msrb.mxu3 %v790_v8 }
  0x5f   :  { %550 = vmatpush.msrb.mxu3 %v793_v13 }
  0x61   :  { %551 = vmatpush.msrb.mxu3 %v796_v16 }
  0x63   :  { %552 = vmatpush.msrb.mxu3 %v815_v29  ;;  %v280_v29 = vld [vmem:[#allocation8 + $0x10] sm:$0xff] }
  0x65   :  { %553 = vmatpush.msrb.mxu3 %v428_v32 }
  0x67   :  { %554 = vmatpush.msrb.mxu3 %v427_v35 }
  0x69   :  { %555 = vmatpush.msrb.mxu3 %v426_v38 }
  0x6b   :  { %556 = vmatpush.msrb.mxu3 %v425_v41 }
  0x6d   :  { %557 = vmatpush.msrb.mxu3 %v424_v44 }
  0x6f   :  { %558 = vmatpush.msrb.mxu3 %v423_v46 }
  0x71   :  { %559 = vmatpush.msrb.mxu3 %v422_v48 }
  0x73   :  { %560 = vmatpush.msrb.mxu3 %v421_v50 }
  0x75   :  { %561 = vmatpush.msrb.mxu3 %v420_v52 }
  0x77   :  { %562 = vmatpush.msrb.mxu3 %v419_v55 }
  0xb1   :  { %v162_v56 = vpop.f32.mrf.mxu0 }
  0xb2   :  { %v194_v57 = vpop.f32.mrf.mxu1 }
  0xb3   :  { %v195_v58 = vadd.f32 %v194_v57, %v162_v56 }
  0xb6   :  { %v258_v60 = vpop.f32.mrf.mxu2 }
  0xb7   :  { %v273_v61 = vadd.f32 %v258_v60, %v195_v58 }
  0xb9   :  { %v287_v62 = vadd.f32 %v827_v59, %v273_v61  ;;  %v165_v63 = vpop.f32.mrf.mxu0 }
  0xba   :  { %v197_v0 = vpop.f32.mrf.mxu1 }
  0xbb   :  { %v292_v3 = vmax.f32 %v287_v62, 0.0  ;;  %v198_v4 = vadd.f32 %v197_v0, %v165_v63 }
  0xbd   :  { %v297_v5 = vmul.f32 %v292_v3, %v278_v1  ;;  %v571_v1 = vld [vmem:[%s860_s4] ss:$0 sm:$0xff]  ;;  %s706_s4 = smov [#allocation10]  }
  0xbe   :  { %v261_v6 = vpop.f32.mrf.mxu2  ;;  %s514_s18 = sshll.u32 %s706_s4, 4  ;;  %s515_s18 = int_to_ptr.vmem [resolvable:$true] %s514_s18 }
  0xbf   :  { %v274_v7 = vadd.f32 %v261_v6, %v198_v4  ;;  %402 = vmatmul.f32.vlgmr.msrb.gmra.mxu0 %v297_v5  ;;  %v340_v16 = vrot.slane %v297_v5, 1  ;;  %v435_v20 = vrot.slane %v297_v5, 2 }
  0xc1   :  { %v288_v8 = vadd.f32 %v827_v59, %v274_v7  ;;  %v168_v9 = vpop.f32.mrf.mxu0 }
  0xc2   :  { %v200_v10 = vpop.f32.mrf.mxu1 }
  0xc3   :  { %v293_v12 = vmax.f32 %v288_v8, 0.0  ;;  %v201_v13 = vadd.f32 %v200_v10, %v168_v9 }
  0xc5   :  { %v298_v14 = vmul.f32 %v293_v12, %v279_v11 }
  0xc6   :  { %v264_v15 = vpop.f32.mrf.mxu2 }
  0xc7   :  { %v275_v18 = vadd.f32 %v264_v15, %v201_v13  ;;  %405 = vmatmul.f32.gmra.mxu0 %v298_v14  ;;  %v341_v19 = vrot.slane %v298_v14, 1  ;;  %v436_v21 = vrot.slane %v298_v14, 2 }
  0xc9   :  { %v289_v23 = vadd.f32 %v827_v59, %v275_v18  ;;  %v342_v24 = vsel %vm130_vm1, %v340_v16, %v341_v19  ;;  %v437_v26 = vsel %vm226_vm0, %v435_v20, %v436_v21  ;;  %v171_v27 = vpop.f32.mrf.mxu0 }
  0xca   :  { %v203_v28 = vpop.f32.mrf.mxu1  ;;  %370 = vmatmul.f32.vlgmr.msra.gmra.mxu3 %v342_v24  ;;  %465 = vmatmul.f32.vlgmr.msrb.gmra.mxu1 %v437_v26 }
  0xcb   :  { %v294_v30 = vmax.f32 %v289_v23, 0.0  ;;  %v204_v31 = vadd.f32 %v203_v28, %v171_v27 }
  0xcd   :  { %v299_v32 = vmul.f32 %v294_v30, %v280_v29 }
  0xce   :  { %v267_v33 = vpop.f32.mrf.mxu2 }
  0xcf   :  { %v276_v34 = vadd.f32 %v267_v33, %v204_v31  ;;  %408 = vmatmul.f32.gmra.mxu0 %v299_v32  ;;  %v343_v35 = vrot.slane %v299_v32, 1  ;;  %v438_v36 = vrot.slane %v299_v32, 2 }
  0xd1   :  { %v290_v37 = vadd.f32 %v827_v59, %v276_v34  ;;  %v344_v38 = vsel %vm130_vm1, %v341_v19, %v343_v35  ;;  %v439_v39 = vsel %vm226_vm0, %v436_v21, %v438_v36  ;;  %v174_v40 = vpop.f32.mrf.mxu0 }
  0xd2   :  { %v206_v41 = vpop.f32.mrf.mxu1  ;;  %373 = vmatmul.f32.gmra.mxu3 %v344_v38  ;;  %468 = vmatmul.f32.gmra.mxu1 %v439_v39 }
  0xd3   :  { %v295_v43 = vmax.f32 %v290_v37, 0.0  ;;  %v207_v44 = vadd.f32 %v206_v41, %v174_v40 }
  0xd5   :  { %v300_v45 = vmul.f32 %v295_v43, %v281_v42 }
  0xd6   :  { %v270_v46 = vpop.f32.mrf.mxu2 }
  0xd7   :  { %v277_v47 = vadd.f32 %v270_v46, %v207_v44  ;;  %411 = vmatmul.f32.vlgmr.msrb.gmra.mxu2 %v300_v45  ;;  %v345_v48 = vrot.slane %v300_v45, 1  ;;  %v440_v49 = vrot.slane %v300_v45, 2 }
  0xd9   :  { %v291_v50 = vadd.f32 %v827_v59, %v277_v47  ;;  %v346_v51 = vsel %vm130_vm1, %v343_v35, %v345_v48  ;;  %v441_v52 = vsel %vm226_vm0, %v438_v36, %v440_v49 }
  0xda   :  { %376 = vmatmul.f32.gmra.mxu3 %v346_v51  ;;  %471 = vmatmul.f32.gmra.mxu1 %v441_v52 }
  0xdb   :  { %v296_v55 = vmax.f32 %v291_v50, 0.0 }
  0xdd   :  { %v301_v56 = vmul.f32 %v296_v55, %v282_v54 }
  0xdf   :  { %414 = vmatmul.f32.gmra.mxu2 %v301_v56  ;;  %v347_v57 = vrot.slane %v301_v56, 1  ;;  %v442_v60 = vrot.slane %v301_v56, 2 }
  0xe1   :  { %v348_v58 = vsel %vm130_vm1, %v345_v48, %v347_v57  ;;  %v443_v61 = vsel %vm226_vm0, %v440_v49, %v442_v60 }
  0xe2   :  { %379 = vmatmul.f32.gmra.mxu3 %v348_v58 }
  0xea   :  { %382 = vmatmul.f32.gmra.mxu3 %v347_v57 }
  0xf2   :  { %474 = vmatmul.f32.vlgmr.msrb.gmra.mxu3 %v443_v61 }
  0xfa   :  { %477 = vmatmul.f32.gmra.mxu3 %v442_v60 }
 0x13c   :  { %v403_v59 = vpop.f32.mrf.mxu0 }
 0x144   :  { %v406_v5 = vpop.f32.mrf.mxu0 }
 0x147   :  { %v466_v62 = vpop.f32.mrf.mxu1 }
 0x14c   :  { %v409_v14 = vpop.f32.mrf.mxu0 }
 0x14d   :  { %v371_v63 = vpop.f32.mrf.mxu3 }
 0x14e   :  { %v404_v0 = vadd.f32 %v403_v59, %v371_v63 }
 0x14f   :  { %v469_v7 = vpop.f32.mrf.mxu1 }
 0x150   :  { %v481_v3 = vadd.f32 %v466_v62, %v404_v0 }
 0x152   :  { %v490_v4 = vadd.f32 %v571_v1, %v481_v3 }
 0x154   :  { %v495_v6 = vadd.f32 %v490_v4, %v771_v53 }
 0x155   :  { %v374_v8 = vpop.f32.mrf.mxu3 }
 0x156   :  { %v500_v9 = vmax.f32 %v495_v6, 0.0  ;;  %v407_v10 = vadd.f32 %v406_v5, %v374_v8 }
 0x157   :  { %v472_v19 = vpop.f32.mrf.mxu1 }
 0x158   :  { %505 = vst [vmem:[#allocation10 + $0x2] sm:$0xff] %v500_v9  ;;  %v482_v11 = vadd.f32 %v469_v7, %v407_v10 }
 0x15a   :  { %v491_v12 = vadd.f32 %v571_v1, %v482_v11  ;;  %v412_v27 = vpop.f32.mrf.mxu2 }
 0x15c   :  { %v496_v13 = vadd.f32 %v491_v12, %v784_v2 }
 0x15d   :  { %v377_v15 = vpop.f32.mrf.mxu3 }
 0x15e   :  { %v501_v16 = vmax.f32 %v496_v13, 0.0  ;;  %v410_v18 = vadd.f32 %v409_v14, %v377_v15 }
 0x160   :  { %506 = vst [vmem:[#allocation10 + $0xa] sm:$0xff] %v501_v16  ;;  %v483_v20 = vadd.f32 %v472_v19, %v410_v18 }
 0x162   :  { %v492_v21 = vadd.f32 %v571_v1, %v483_v20  ;;  %v415_v32 = vpop.f32.mrf.mxu2 }
 0x164   :  { %v497_v23 = vadd.f32 %v492_v21, %v799_v17 }
 0x165   :  { %v380_v53 = vpop.f32.mrf.mxu3 }
 0x166   :  { %v502_v24 = vmax.f32 %v497_v23, 0.0  ;;  %v413_v28 = vadd.f32 %v412_v27, %v380_v53 }
 0x168   :  { %507 = vst [vmem:[#allocation10 + $0x12] sm:$0xff] %v502_v24 }
 0x16d   :  { %v383_v26 = vpop.f32.mrf.mxu3 }
 0x16e   :  { %v416_v33 = vadd.f32 %v415_v32, %v383_v26 }
 0x175   :  { %v475_v29 = vpop.f32.mrf.mxu3 }
 0x176   :  { %v484_v30 = vadd.f32 %v475_v29, %v413_v28 }
 0x178   :  { %v493_v31 = vadd.f32 %v571_v1, %v484_v30 }
 0x17a   :  { %v498_v2 = vadd.f32 %v493_v31, %v810_v25 }
 0x17c   :  { %v503_v34 = vmax.f32 %v498_v2, 0.0 }
 0x17d   :  { %v478_v35 = vpop.f32.mrf.mxu3 }
 0x17e   :  { %508 = vst [vmem:[#allocation10 + $0x1a] sm:$0xff] %v503_v34  ;;  %v485_v36 = vadd.f32 %v478_v35, %v416_v33 }
 0x180   :  { %v494_v37 = vadd.f32 %v571_v1, %v485_v36 }
 0x182   :  { %v499_v17 = vadd.f32 %v494_v37, %v806_v22 }
 0x184   :  { %v504_v38 = vmax.f32 %v499_v17, 0.0 }
 0x186   :  { %509 = vst [vmem:[#allocation10 + $0x22] sm:$0xf] %v504_v38 }
 0x187   :  { %522 = dma.vmem_to_hbm [thread:$0]  %s515_s18, 640, %s517_s21, [#allocation4], %s701_s29, %s701_s29, %s702_s30  }
 0x188   :  { %698 = dma.done.wait [#allocation4], 640  }
 0x189   :  { %699 = vsyncadd [#allocation4], 4294966656 }
 0x18a   :  { %527 = vsyncpa [#allocation3], 1 }
 0x18b   :  { %528 = vsyncpa [#allocation6], 1 }
 0x18c   :  { %529 = vsyncpa [#allocation9], 1 }
 0x18d   :  { %530 = vsyncpa [#allocation4], 1 }

</bundles_post_ra>
